<compile_context>
chip_gen: v7x
topology: tpu7x:2x2x1
jax: 0.10.0
libtpu: 0.0.40
codegen_flags: <defaults>
</compile_context>

<pallas_src>
import jax
import jax.numpy as jnp
from jax.experimental import pallas as pl
from jax.experimental.pallas import tpu as pltpu

BN_EPS = 1e-5


def _round_up(x, m):
    return (x + m - 1) // m * m


# ---------------- Pallas kernel 1: conv-as-matmul + BN partial statistics ----------
def _matmul_stats_kernel(x_ref, w_ref, o_ref, s_ref):
    """x_ref: (TM, Kp) bf16 im2col rows; w_ref: (Kp, TN) bf16 weight panel.
    o_ref: (TM, TN) f32 conv output tile.
    s_ref: (2, TN) f32 -- row 0 = sum over rows, row 1 = sum of squares,
           accumulated across the row-tile (last, 'arbitrary') grid axis.
    """
    acc = jnp.dot(x_ref[...], w_ref[...], preferred_element_type=jnp.float32)
    o_ref[...] = acc

    part = jnp.concatenate(
        [jnp.sum(acc, axis=0, keepdims=True),
         jnp.sum(acc * acc, axis=0, keepdims=True)],
        axis=0)

    @pl.when(pl.program_id(1) == 0)
    def _init():
        s_ref[...] = part

    @pl.when(pl.program_id(1) != 0)
    def _accumulate():
        s_ref[...] += part


# ---------------- Pallas kernel 2: BN normalize (gamma folded) + ReLU ---------------
def _bn_relu_kernel(y_ref, scale_ref, shift_ref, o_ref):
    o_ref[...] = jnp.maximum(y_ref[...] * scale_ref[...] + shift_ref[...], 0.0)


# ------------------------------- conv block wrapper ---------------------------------
def _conv_bn_relu(x_nhwc, w_pt, bias, gamma, beta, padding):
    """One (Conv2d k=3 -> BatchNorm2d(train stats) -> ReLU) block. x_nhwc: (N,H,W,Cin)."""
    del bias  # Cancelled exactly by the batch-stat mean subtraction in BN (training mode).

    if padding > 0:
        x_nhwc = jnp.pad(
            x_nhwc, ((0, 0), (padding, padding), (padding, padding), (0, 0)))
    N, Hin, Win, Cin = x_nhwc.shape
    Cout = w_pt.shape[0]
    Ho, Wo = Hin - 2, Win - 2
    P = N * Ho * Wo          # real number of output pixels (rows)
    K = 9 * Cin              # im2col depth

    # ---- tile sizes (multiples of (8, 128); sized for the 64 MiB-VMEM v7x budget) ----
    TM = 256 if P >= 256 else _round_up(P, 8)
    TN = 256 if Cout >= 256 else 128
    Pp = _round_up(P, TM)
    Kp = _round_up(K, 128)
    Cp = _round_up(Cout, TN)
    num_n = Cp // TN
    num_m = Pp // TM

    # ---- glue: im2col in bf16 (halves HBM traffic / VMEM footprint of big operand) ----
    xb = x_nhwc.astype(jnp.bfloat16)
    taps = [xb[:, kh:kh + Ho, kw:kw + Wo, :] for kh in range(3) for kw in range(3)]
    xcol = jnp.stack(taps, axis=-2).reshape(P, K)          # (P, 9*Cin)
    xcol = jnp.pad(xcol, ((0, Pp - P), (0, Kp - K)))

    # PyTorch (Cout, Cin, 3, 3) -> (kh, kw, Cin, Cout) -> (9*Cin, Cout), bf16, padded.
    wcol = jnp.transpose(w_pt, (2, 3, 1, 0)).reshape(K, Cout).astype(jnp.bfloat16)
    wcol = jnp.pad(wcol, ((0, Kp - K), (0, Cp - Cout)))

    cost1 = pl.CostEstimate(
        flops=2 * Pp * Kp * Cp,
        transcendentals=0,
        bytes_accessed=xcol.size * 2 * num_n + wcol.size * 2 + Pp * Cp * 4 + Cp * 8)

    conv, stats = pl.pallas_call(
        _matmul_stats_kernel,
        out_shape=(jax.ShapeDtypeStruct((Pp, Cp), jnp.float32),
                   jax.ShapeDtypeStruct((2, Cp), jnp.float32)),
        grid=(num_n, num_m),
        in_specs=[
            pl.BlockSpec((TM, Kp), lambda j, i: (i, 0)),   # activation row tile
            pl.BlockSpec((Kp, TN), lambda j, i: (0, j)),   # weight panel: reused over rows
        ],
        out_specs=(
            pl.BlockSpec((TM, TN), lambda j, i: (i, j)),   # conv output tile
            pl.BlockSpec((2, TN), lambda j, i: (0, j)),    # stats: resident across row tiles
        ),
        compiler_params=pltpu.CompilerParams(
            dimension_semantics=("parallel", "arbitrary"),
            vmem_limit_bytes=48 * 1024 * 1024),
        cost_estimate=cost1,
    )(xcol, wcol)

    # ---- finalize BN statistics (tiny, per-channel; padded rows contributed zeros) ----
    inv_p = 1.0 / float(P)
    mean = stats[0] * inv_p
    var = jnp.maximum(stats[1] * inv_p - mean * mean, 0.0)
    g = jnp.pad(gamma, (0, Cp - Cout))
    b = jnp.pad(beta, (0, Cp - Cout))
    scale = g * jax.lax.rsqrt(var + BN_EPS)
    shift = b - mean * scale

    cost2 = pl.CostEstimate(
        flops=2 * Pp * Cp, transcendentals=0, bytes_accessed=2 * Pp * Cp * 4)

    y = pl.pallas_call(
        _bn_relu_kernel,
        out_shape=jax.ShapeDtypeStruct((Pp, Cp), jnp.float32),
        grid=(num_m, num_n),
        in_specs=[
            pl.BlockSpec((TM, TN), lambda i, j: (i, j)),
            pl.BlockSpec((1, TN), lambda i, j: (0, j)),
            pl.BlockSpec((1, TN), lambda i, j: (0, j)),
        ],
        out_specs=pl.BlockSpec((TM, TN), lambda i, j: (i, j)),
        compiler_params=pltpu.CompilerParams(
            dimension_semantics=("parallel", "parallel")),
        cost_estimate=cost2,
    )(conv, scale.reshape(1, Cp), shift.reshape(1, Cp))

    return y[:P, :Cout].reshape(N, Ho, Wo, Cout)


@jax.jit
def bottleneck_forward(x_nchw, params):
    """BottleNeck.forward: NCHW in, NCHW out (ConvolutionBlock with paddings (0, 2))."""
    x = jnp.transpose(x_nchw, (0, 2, 3, 1))  # NCHW -> NHWC
    y = _conv_bn_relu(x, params["w1"], params["b1"], params["g1"], params["be1"], 0)
    y = _conv_bn_relu(y, params["w2"], params["b2"], params["g2"], params["be2"], 2)
    return jnp.transpose(y, (0, 3, 1, 2))    # NHWC -> NCHW


# --------------------------- param init (deterministic) -----------------------------
def init_params(key, cin, cout):
    k0, k1, k2, k3 = jax.random.split(key, 4)
    b1lim = 1.0 / jnp.sqrt(float(cin * 9))
    b2lim = 1.0 / jnp.sqrt(float(cout * 9))
    return {
        # PyTorch Conv2d weight layout: (Cout, Cin, 3, 3)
        "w1": jax.random.uniform(k0, (cout, cin, 3, 3), jnp.float32, -b1lim, b1lim),
        "b1": jax.random.uniform(k1, (cout,), jnp.float32, -b1lim, b1lim),
        "g1": jnp.ones((cout,), jnp.float32),
        "be1": jnp.zeros((cout,), jnp.float32),
        "w2": jax.random.uniform(k2, (cout, cout, 3, 3), jnp.float32, -b2lim, b2lim),
        "b2": jax.random.uniform(k3, (cout,), jnp.float32, -b2lim, b2lim),
        "g2": jnp.ones((cout,), jnp.float32),
        "be2": jnp.zeros((cout,), jnp.float32),
    }


# ------------------------------ pure-JAX f32 reference -------------------------------
def _reference(x_nchw, p):
    def conv(x, w, b, pad):
        y = jax.lax.conv_general_dilated(
            x, w, (1, 1), [(pad, pad), (pad, pad)],
            dimension_numbers=("NCHW", "OIHW", "NCHW"),
            precision=jax.lax.Precision.HIGHEST,
        )
        return y + b[None, :, None, None]

    def bn_relu(y, g, b):
        mean = jnp.mean(y, axis=(0, 2, 3), keepdims=True)
        var = jnp.mean(jnp.square(y - mean), axis=(0, 2, 3), keepdims=True)
        yn = (y - mean) * jax.lax.rsqrt(var + BN_EPS)
        yn = yn * g[None, :, None, None] + b[None, :, None, None]
        return jnp.maximum(yn, 0.0)

    y = bn_relu(conv(x_nchw, p["w1"], p["b1"], 0), p["g1"], p["be1"])
    y = bn_relu(conv(y, p["w2"], p["b2"], 2), p["g2"], p["be2"])
    return y


if __name__ == "__main__":
    # Small stand-in shapes for the real 512 -> 1024 BottleNeck.
    N, CIN, COUT, HW = 2, 4, 8, 16
    key = jax.random.PRNGKey(0)
    kx, kp = jax.random.split(key)
    x = jax.random.normal(kx, (N, CIN, HW, HW), jnp.float32)
    params = init_params(kp, CIN, COUT)

    out = jax.block_until_ready(bottleneck_forward(x, params))
    assert out.shape == (N, COUT, HW, HW), out.shape  # 16 -> (pad0) 14 -> (pad2) 16

    ref = jax.block_until_ready(_reference(x, params))
    max_err = float(jnp.max(jnp.abs(out - ref)))
    # bf16 MXU operands with f32 accumulation; statistics in f32.
    assert jnp.allclose(out, ref, rtol=2e-2, atol=2e-2), max_err

    print("KERNEL_OK")
</pallas_src>

<mosaic_0001>
module attributes {stable_mosaic.version = 11 : i64} {
  func.func @_matmul_stats_kernel(%arg0: i32, %arg1: i32, %arg2: memref<256x128xbf16, #tpu.memory_space<vmem>>, %arg3: memref<128x128xbf16, #tpu.memory_space<vmem>>, %arg4: memref<256x128xf32, #tpu.memory_space<vmem>>, %arg5: memref<2x128xf32, #tpu.memory_space<vmem>>) attributes {dimension_semantics = [#tpu.dimension_semantics<parallel>, #tpu.dimension_semantics<arbitrary>], iteration_bounds = array<i64: 1, 2>, scalar_prefetch = 0 : i64, scratch_operands = 0 : i64, tpu.core_type = #tpu.core_type<tc>, window_params = [{transform_indices = @transform_0, window_bounds = array<i64: 256, 128>}, {transform_indices = @transform_1, window_bounds = array<i64: 128, 128>}, {transform_indices = @transform_2, window_bounds = array<i64: 256, 128>}, {transform_indices = @transform_3, window_bounds = array<i64: 2, 128>}]} {
    %c0 = arith.constant 0 : index
    %c0_0 = arith.constant 0 : index
    %0 = vector.load %arg2[%c0, %c0_0] : memref<256x128xbf16, #tpu.memory_space<vmem>>, vector<256x128xbf16>
    %c0_1 = arith.constant 0 : index
    %c0_2 = arith.constant 0 : index
    %1 = vector.load %arg3[%c0_1, %c0_2] : memref<128x128xbf16, #tpu.memory_space<vmem>>, vector<128x128xbf16>
    %cst = arith.constant dense<0.000000e+00> : vector<256x128xf32>
    %2 = tpu.matmul %0, %1, %cst {dimension_numbers = #tpu.dot_dimension_numbers<[1], [0], [0], [1], [0, 0, 1, 1], [], []>} : vector<256x128xbf16>, vector<128x128xbf16>, vector<256x128xf32> -> vector<256x128xf32>
    %c0_3 = arith.constant 0 : index
    %c0_4 = arith.constant 0 : index
    %3 = vector.load %arg4[%c0_3, %c0_4] : memref<256x128xf32, #tpu.memory_space<vmem>>, vector<256x128xf32>
    tpu.vector_store %arg4[%c0_3, %c0_4], %2 {strides = array<i32>} : memref<256x128xf32, #tpu.memory_space<vmem>>, vector<256x128xf32>,
    %cst_5 = arith.constant dense<0.000000e+00> : vector<128xf32>
    %4 = vector.multi_reduction <add>, %2, %cst_5 [0] : vector<256x128xf32> to vector<128xf32>
    %5 = vector.shape_cast %4 : vector<128xf32> to vector<1x128xf32>
    %6 = arith.mulf %2, %2 : vector<256x128xf32>
    %cst_6 = arith.constant dense<0.000000e+00> : vector<128xf32>
    %7 = vector.multi_reduction <add>, %6, %cst_6 [0] : vector<256x128xf32> to vector<128xf32>
    %8 = vector.shape_cast %7 : vector<128xf32> to vector<1x128xf32>
    %9 = tpu.concatenate %5, %8 in 0 : vector<1x128xf32>, vector<1x128xf32> -> vector<2x128xf32>
    %c0_i32 = arith.constant 0 : i32
    %10 = arith.cmpi eq, %arg1, %c0_i32 : i32
    %11 = arith.extui %10 : i1 to i32
    %c0_i32_7 = arith.constant 0 : i32
    %12 = arith.cmpi ne, %11, %c0_i32_7 : i32
    scf.if %12 {
      %c0_10 = arith.constant 0 : index
      %c0_11 = arith.constant 0 : index
      %16 = vector.load %arg5[%c0_10, %c0_11] : memref<2x128xf32, #tpu.memory_space<vmem>>, vector<2x128xf32>
      tpu.vector_store %arg5[%c0_10, %c0_11], %9 {strides = array<i32>} : memref<2x128xf32, #tpu.memory_space<vmem>>, vector<2x128xf32>,
    } else {
    }
    %c0_i32_8 = arith.constant 0 : i32
    %13 = arith.cmpi ne, %arg1, %c0_i32_8 : i32
    %14 = arith.extui %13 : i1 to i32
    %c0_i32_9 = arith.constant 0 : i32
    %15 = arith.cmpi ne, %14, %c0_i32_9 : i32
    scf.if %15 {
      %c0_10 = arith.constant 0 : index
      %c0_11 = arith.constant 0 : index
      %16 = vector.load %arg5[%c0_10, %c0_11] : memref<2x128xf32, #tpu.memory_space<vmem>>, vector<2x128xf32>
      %17 = arith.addf %16, %9 : vector<2x128xf32>
      %c0_12 = arith.constant 0 : index
      %c0_13 = arith.constant 0 : index
      %18 = vector.load %arg5[%c0_12, %c0_13] : memref<2x128xf32, #tpu.memory_space<vmem>>, vector<2x128xf32>
      tpu.vector_store %arg5[%c0_12, %c0_13], %17 {strides = array<i32>} : memref<2x128xf32, #tpu.memory_space<vmem>>, vector<2x128xf32>,
    } else {
    }
    return
  }
  func.func @transform_0(%arg0: i32, %arg1: i32) -> (i32, i32) {
    %c0_i32 = arith.constant 0 : i32
    %c0_i32_0 = arith.constant 0 : i32
    return %arg1, %c0_i32 : i32, i32
  }
  func.func @transform_1(%arg0: i32, %arg1: i32) -> (i32, i32) {
    %c0_i32 = arith.constant 0 : i32
    %c0_i32_0 = arith.constant 0 : i32
    return %c0_i32, %arg0 : i32, i32
  }
  func.func @transform_2(%arg0: i32, %arg1: i32) -> (i32, i32) {
    %c0_i32 = arith.constant 0 : i32
    return %arg1, %arg0 : i32, i32
  }
  func.func @transform_3(%arg0: i32, %arg1: i32) -> (i32, i32) {
    %c0_i32 = arith.constant 0 : i32
    %c0_i32_0 = arith.constant 0 : i32
    return %c0_i32, %arg0 : i32, i32
  }
}

module attributes {stable_mosaic.version = 11 : i64} {
  func.func @_bn_relu_kernel(%arg0: i32, %arg1: i32, %arg2: memref<256x128xf32, #tpu.memory_space<vmem>>, %arg3: memref<1x128xf32, #tpu.memory_space<vmem>>, %arg4: memref<1x128xf32, #tpu.memory_space<vmem>>, %arg5: memref<256x128xf32, #tpu.memory_space<vmem>>) attributes {dimension_semantics = [#tpu.dimension_semantics<parallel>, #tpu.dimension_semantics<parallel>], iteration_bounds = array<i64: 2, 1>, scalar_prefetch = 0 : i64, scratch_operands = 0 : i64, tpu.core_type = #tpu.core_type<tc>, window_params = [{transform_indices = @transform_0, window_bounds = array<i64: 256, 128>}, {transform_indices = @transform_1, window_bounds = array<i64: 1, 128>}, {transform_indices = @transform_2, window_bounds = array<i64: 1, 128>}, {transform_indices = @transform_3, window_bounds = array<i64: 256, 128>}]} {
    %c0 = arith.constant 0 : index
    %c0_0 = arith.constant 0 : index
    %0 = vector.load %arg2[%c0, %c0_0] : memref<256x128xf32, #tpu.memory_space<vmem>>, vector<256x128xf32>
    %c0_1 = arith.constant 0 : index
    %c0_2 = arith.constant 0 : index
    %1 = vector.load %arg3[%c0_1, %c0_2] : memref<1x128xf32, #tpu.memory_space<vmem>>, vector<1x128xf32>
    %2 = vector.broadcast %1 : vector<1x128xf32> to vector<256x128xf32>
    %3 = arith.mulf %0, %2 : vector<256x128xf32>
    %c0_3 = arith.constant 0 : index
    %c0_4 = arith.constant 0 : index
    %4 = vector.load %arg4[%c0_3, %c0_4] : memref<1x128xf32, #tpu.memory_space<vmem>>, vector<1x128xf32>
    %5 = vector.broadcast %4 : vector<1x128xf32> to vector<256x128xf32>
    %6 = arith.addf %3, %5 : vector<256x128xf32>
    %cst = arith.constant 0.000000e+00 : f32
    %7 = vector.broadcast %cst : f32 to vector<256x128xf32>
    %8 = arith.maximumf %6, %7 : vector<256x128xf32>
    %c0_5 = arith.constant 0 : index
    %c0_6 = arith.constant 0 : index
    %9 = vector.load %arg5[%c0_5, %c0_6] : memref<256x128xf32, #tpu.memory_space<vmem>>, vector<256x128xf32>
    tpu.vector_store %arg5[%c0_5, %c0_6], %8 {strides = array<i32>} : memref<256x128xf32, #tpu.memory_space<vmem>>, vector<256x128xf32>,
    return
  }
  func.func @transform_0(%arg0: i32, %arg1: i32) -> (i32, i32) {
    %c0_i32 = arith.constant 0 : i32
    return %arg0, %arg1 : i32, i32
  }
  func.func @transform_1(%arg0: i32, %arg1: i32) -> (i32, i32) {
    %c0_i32 = arith.constant 0 : i32
    %c0_i32_0 = arith.constant 0 : i32
    return %c0_i32, %arg1 : i32, i32
  }
  func.func @transform_2(%arg0: i32, %arg1: i32) -> (i32, i32) {
    %c0_i32 = arith.constant 0 : i32
    %c0_i32_0 = arith.constant 0 : i32
    return %c0_i32, %arg1 : i32, i32
  }
  func.func @transform_3(%arg0: i32, %arg1: i32) -> (i32, i32) {
    %c0_i32 = arith.constant 0 : i32
    return %arg0, %arg1 : i32, i32
  }
}

</mosaic_0001>

<bundles_post_ra>
// kernel: bottleneck_forward.5
= control target key start
LH: loop header
LB: loop body
LE: loop exit
PB: predicated region body
PF: predicated region fallthrough
CT: control target
= control target key end

     0   :  { %s592_s12 = smov 0   ;;  %s594_s13 = smov 0   ;;  %s767_s0 = inlined_call_operand.vmem [shape: f32[512,128], index: 0, kind: input, shape index: {}]   ;;  %s768_s1 = inlined_call_operand.vmem [shape: f32[1,128], index: 1, kind: input, shape index: {}]   ;;  %s769_s2 = inlined_call_operand.vmem [shape: f32[1,128], index: 2, kind: input, shape index: {}]   ;;  %s770_s3 = inlined_call_operand.vmem [shape: f32[512,128], index: 3, kind: output, shape index: {}]  }
   0x1   :  { %s596_s14 = smov 0  }
   0x2 LB: > { %s25_s15 = sadd.s32 1, %s566_s13  ;;  %p515_p0 = scmp.ge.s32.totalorder %s570_s14, 1  ;;  %s570_s14 = sphi %s596_s14, %s13_s14   ;;  %s566_s13 = sphi %s594_s13, %s772_s13   ;;  %s562_s12 = sphi %s592_s12, %s771_s12  }
   0x3   : > { %p27_p1 = scmp.ge.s32.totalorder %s25_s15, 2  ;;  %p173_p2 = scmp.lt.s32.totalorder %s570_s14, 3 }
   0x5   : > { %s774_s15 = smov (%p27_p1, %s25_s15), 0  ;;  %p174_p3 = pnand %p515_p0, %p173_p2 }
   0x6   : > { %s516_s16 = sshll.u32 (!%p174_p3), %s562_s12, 5  ;;  %v613_v0 = vld [vmem:[%s768_s1] ss:$0 sm:$0xff] (!%p174_p3) }
   0x7   : > { %177 = sbr.rel (%p174_p3) target bundleno = 47 (0x2f), region = 32  ;;  %p210_p4 = scmp.lt.s32.totalorder (!%p174_p3), %s516_s16, 63  ;;  %v623_v1 = vld [vmem:[%s769_s2] ss:$0 sm:$0xff] (!%p174_p3) }
   0xe   : > { %s776_s16 = smov (!%p210_p4, %s516_s16), 63 }
   0xf   : > { %s517_s17 = sshll.u32 %s776_s16, 3 }
  0x10   : > { %s618_s22 = scalar_lea.vmem %s767_s0, %s517_s17  ;;  %s646_s27 = scalar_lea.vmem %s770_s3, %s517_s17 }
  0x11   : > { %v233_v2 = vld [vmem:[%s618_s22] sm:$0xff]  ;;  %v234_v3 = vld [vmem:[%s618_s22 + $0x8] sm:$0xff]  ;;  %v235_v4 = vld [vmem:[%s618_s22 + $0x10] sm:$0xff] }
  0x12   : > { %v272_v5 = vmul.f32 %v613_v0, %v233_v2  ;;  %v273_v6 = vmul.f32 %v613_v0, %v234_v3  ;;  %v274_v7 = vmul.f32 %v613_v0, %v235_v4  ;;  %v236_v8 = vld [vmem:[%s618_s22 + $0x18] sm:$0xff]  ;;  %v237_v9 = vld [vmem:[%s618_s22 + $0x20] sm:$0xff]  ;;  %v238_v10 = vld [vmem:[%s618_s22 + $0x28] sm:$0xff] }
  0x13   : > { %v275_v11 = vmul.f32 %v613_v0, %v236_v8  ;;  %v276_v12 = vmul.f32 %v613_v0, %v237_v9  ;;  %v277_v13 = vmul.f32 %v613_v0, %v238_v10  ;;  %v239_v14 = vld [vmem:[%s618_s22 + $0x30] sm:$0xff]  ;;  %v240_v15 = vld [vmem:[%s618_s22 + $0x38] sm:$0xff]  ;;  %v241_v24 = vld [vmem:[%s618_s22 + $0x40] sm:$0xff] }
  0x14   : > { %v311_v16 = vadd.f32 %v623_v1, %v272_v5  ;;  %v312_v17 = vadd.f32 %v623_v1, %v273_v6  ;;  %v313_v18 = vadd.f32 %v623_v1, %v274_v7  ;;  %v278_v19 = vmul.f32 %v613_v0, %v239_v14  ;;  %v242_v25 = vld [vmem:[%s618_s22 + $0x48] sm:$0xff]  ;;  %v243_v26 = vld [vmem:[%s618_s22 + $0x50] sm:$0xff]  ;;  %v244_v31 = vld [vmem:[%s618_s22 + $0x58] sm:$0xff] }
  0x15   : > { %v314_v20 = vadd.f32 %v623_v1, %v275_v11  ;;  %v315_v21 = vadd.f32 %v623_v1, %v276_v12  ;;  %v316_v22 = vadd.f32 %v623_v1, %v277_v13  ;;  %v279_v23 = vmul.f32 %v613_v0, %v240_v15  ;;  %v245_v32 = vld [vmem:[%s618_s22 + $0x60] sm:$0xff]  ;;  %v246_v33 = vld [vmem:[%s618_s22 + $0x68] sm:$0xff]  ;;  %v247_v38 = vld [vmem:[%s618_s22 + $0x70] sm:$0xff] }
  0x16   : > { %v343_v27 = vmax.f32 %v311_v16, 0.0  ;;  %v344_v28 = vmax.f32 %v312_v17, 0.0  ;;  %v345_v29 = vmax.f32 %v313_v18, 0.0  ;;  %v317_v30 = vadd.f32 %v623_v1, %v278_v19  ;;  %v248_v43 = vld [vmem:[%s618_s22 + $0x78] sm:$0xff]  ;;  %v249_v56 = vld [vmem:[%s618_s22 + $0x80] sm:$0xff]  ;;  %v250_v57 = vld [vmem:[%s618_s22 + $0x88] sm:$0xff] }
  0x17   : > { %v346_v34 = vmax.f32 %v314_v20, 0.0  ;;  %v347_v35 = vmax.f32 %v315_v21, 0.0  ;;  %v348_v36 = vmax.f32 %v316_v22, 0.0  ;;  %v318_v37 = vadd.f32 %v623_v1, %v279_v23  ;;  %v251_v58 = vld [vmem:[%s618_s22 + $0x90] sm:$0xff]  ;;  %v252_v63 = vld [vmem:[%s618_s22 + $0x98] sm:$0xff]  ;;  %v253_v2 = vld [vmem:[%s618_s22 + $0xa0] sm:$0xff] }
  0x18   : > { %375 = vst [vmem:[%s646_s27] sm:$0xff] %v343_v27  ;;  %376 = vst [vmem:[%s646_s27 + $0x8] sm:$0xff] %v344_v28  ;;  %v349_v39 = vmax.f32 %v317_v30, 0.0  ;;  %v280_v40 = vmul.f32 %v613_v0, %v241_v24  ;;  %v281_v41 = vmul.f32 %v613_v0, %v242_v25  ;;  %v282_v42 = vmul.f32 %v613_v0, %v243_v26  ;;  %v254_v3 = vld [vmem:[%s618_s22 + $0xa8] sm:$0xff]  ;;  %v255_v8 = vld [vmem:[%s618_s22 + $0xb0] sm:$0xff] }
  0x19   : > { %377 = vst [vmem:[%s646_s27 + $0x10] sm:$0xff] %v345_v29  ;;  %378 = vst [vmem:[%s646_s27 + $0x18] sm:$0xff] %v346_v34  ;;  %v350_v44 = vmax.f32 %v318_v37, 0.0  ;;  %v283_v45 = vmul.f32 %v613_v0, %v244_v31  ;;  %v284_v46 = vmul.f32 %v613_v0, %v245_v32  ;;  %v285_v47 = vmul.f32 %v613_v0, %v246_v33  ;;  %v256_v13 = vld [vmem:[%s618_s22 + $0xb8] sm:$0xff]  ;;  %v257_v26 = vld [vmem:[%s618_s22 + $0xc0] sm:$0xff] }
  0x1a   : > { %379 = vst [vmem:[%s646_s27 + $0x20] sm:$0xff] %v347_v35  ;;  %380 = vst [vmem:[%s646_s27 + $0x28] sm:$0xff] %v348_v36  ;;  %v319_v48 = vadd.f32 %v623_v1, %v280_v40  ;;  %v320_v49 = vadd.f32 %v623_v1, %v281_v41  ;;  %v321_v50 = vadd.f32 %v623_v1, %v282_v42  ;;  %v258_v27 = vld [vmem:[%s618_s22 + $0xc8] sm:$0xff]  ;;  %v259_v28 = vld [vmem:[%s618_s22 + $0xd0] sm:$0xff] }
  0x1b   : > { %381 = vst [vmem:[%s646_s27 + $0x30] sm:$0xff] %v349_v39  ;;  %v286_v51 = vmul.f32 %v613_v0, %v247_v38  ;;  %382 = vst [vmem:[%s646_s27 + $0x38] sm:$0xff] %v350_v44  ;;  %v322_v52 = vadd.f32 %v623_v1, %v283_v45  ;;  %v323_v53 = vadd.f32 %v623_v1, %v284_v46  ;;  %v260_v33 = vld [vmem:[%s618_s22 + $0xd8] sm:$0xff]  ;;  %v261_v34 = vld [vmem:[%s618_s22 + $0xe0] sm:$0xff] }
  0x1c   : > { %v324_v54 = vadd.f32 %v623_v1, %v285_v47  ;;  %v287_v55 = vmul.f32 %v613_v0, %v248_v43  ;;  %v351_v59 = vmax.f32 %v319_v48, 0.0  ;;  %v352_v60 = vmax.f32 %v320_v49, 0.0  ;;  %v262_v35 = vld [vmem:[%s618_s22 + $0xe8] sm:$0xff]  ;;  %v263_v40 = vld [vmem:[%s618_s22 + $0xf0] sm:$0xff]  ;;  %v264_v45 = vld [vmem:[%s618_s22 + $0xf8] sm:$0xff] }
  0x1d   : > { %v353_v61 = vmax.f32 %v321_v50, 0.0  ;;  %v325_v62 = vadd.f32 %v623_v1, %v286_v51  ;;  %v354_v4 = vmax.f32 %v322_v52, 0.0  ;;  %v355_v5 = vmax.f32 %v323_v53, 0.0 }
  0x1e   : > { %v356_v6 = vmax.f32 %v324_v54, 0.0  ;;  %v326_v7 = vadd.f32 %v623_v1, %v287_v55  ;;  %383 = vst [vmem:[%s646_s27 + $0x40] sm:$0xff] %v351_v59  ;;  %384 = vst [vmem:[%s646_s27 + $0x48] sm:$0xff] %v352_v60  ;;  %v288_v10 = vmul.f32 %v613_v0, %v249_v56  ;;  %v289_v11 = vmul.f32 %v613_v0, %v250_v57 }
  0x1f   : > { %385 = vst [vmem:[%s646_s27 + $0x50] sm:$0xff] %v353_v61  ;;  %v357_v9 = vmax.f32 %v325_v62, 0.0  ;;  %v290_v12 = vmul.f32 %v613_v0, %v251_v58  ;;  %386 = vst [vmem:[%s646_s27 + $0x58] sm:$0xff] %v354_v4  ;;  %v291_v15 = vmul.f32 %v613_v0, %v252_v63  ;;  %v292_v16 = vmul.f32 %v613_v0, %v253_v2 }
  0x20   : > { %387 = vst [vmem:[%s646_s27 + $0x60] sm:$0xff] %v355_v5  ;;  %388 = vst [vmem:[%s646_s27 + $0x68] sm:$0xff] %v356_v6  ;;  %v358_v14 = vmax.f32 %v326_v7, 0.0  ;;  %v293_v17 = vmul.f32 %v613_v0, %v254_v3  ;;  %v327_v18 = vadd.f32 %v623_v1, %v288_v10  ;;  %v328_v19 = vadd.f32 %v623_v1, %v289_v11 }
  0x21   : > { %389 = vst [vmem:[%s646_s27 + $0x70] sm:$0xff] %v357_v9  ;;  %v329_v20 = vadd.f32 %v623_v1, %v290_v12  ;;  %v294_v21 = vmul.f32 %v613_v0, %v255_v8  ;;  %v330_v22 = vadd.f32 %v623_v1, %v291_v15  ;;  %v331_v23 = vadd.f32 %v623_v1, %v292_v16 }
  0x22   : > { %390 = vst [vmem:[%s646_s27 + $0x78] sm:$0xff] %v358_v14  ;;  %v332_v24 = vadd.f32 %v623_v1, %v293_v17  ;;  %v295_v25 = vmul.f32 %v613_v0, %v256_v13  ;;  %v359_v29 = vmax.f32 %v327_v18, 0.0  ;;  %v360_v30 = vmax.f32 %v328_v19, 0.0 }
  0x23   : > { %v361_v31 = vmax.f32 %v329_v20, 0.0  ;;  %v333_v32 = vadd.f32 %v623_v1, %v294_v21  ;;  %v362_v36 = vmax.f32 %v330_v22, 0.0  ;;  %v363_v37 = vmax.f32 %v331_v23, 0.0 }
  0x24   : > { %v364_v38 = vmax.f32 %v332_v24, 0.0  ;;  %v334_v39 = vadd.f32 %v623_v1, %v295_v25  ;;  %391 = vst [vmem:[%s646_s27 + $0x80] sm:$0xff] %v359_v29  ;;  %392 = vst [vmem:[%s646_s27 + $0x88] sm:$0xff] %v360_v30  ;;  %v296_v42 = vmul.f32 %v613_v0, %v257_v26  ;;  %v297_v43 = vmul.f32 %v613_v0, %v258_v27 }
  0x25   : > { %393 = vst [vmem:[%s646_s27 + $0x90] sm:$0xff] %v361_v31  ;;  %v365_v41 = vmax.f32 %v333_v32, 0.0  ;;  %v298_v44 = vmul.f32 %v613_v0, %v259_v28  ;;  %394 = vst [vmem:[%s646_s27 + $0x98] sm:$0xff] %v362_v36  ;;  %v299_v47 = vmul.f32 %v613_v0, %v260_v33  ;;  %v300_v48 = vmul.f32 %v613_v0, %v261_v34 }
  0x26   : > { %395 = vst [vmem:[%s646_s27 + $0xa0] sm:$0xff] %v363_v37  ;;  %396 = vst [vmem:[%s646_s27 + $0xa8] sm:$0xff] %v364_v38  ;;  %v366_v46 = vmax.f32 %v334_v39, 0.0  ;;  %v301_v49 = vmul.f32 %v613_v0, %v262_v35  ;;  %v335_v50 = vadd.f32 %v623_v1, %v296_v42  ;;  %v336_v51 = vadd.f32 %v623_v1, %v297_v43 }
  0x27   : > { %397 = vst [vmem:[%s646_s27 + $0xb0] sm:$0xff] %v365_v41  ;;  %v337_v52 = vadd.f32 %v623_v1, %v298_v44  ;;  %v302_v53 = vmul.f32 %v613_v0, %v263_v40  ;;  %v338_v54 = vadd.f32 %v623_v1, %v299_v47  ;;  %v339_v55 = vadd.f32 %v623_v1, %v300_v48 }
  0x28   : > { %398 = vst [vmem:[%s646_s27 + $0xb8] sm:$0xff] %v366_v46  ;;  %v340_v56 = vadd.f32 %v623_v1, %v301_v49  ;;  %v303_v57 = vmul.f32 %v613_v0, %v264_v45  ;;  %v367_v58 = vmax.f32 %v335_v50, 0.0  ;;  %v368_v59 = vmax.f32 %v336_v51, 0.0 }
  0x29   : > { %v369_v60 = vmax.f32 %v337_v52, 0.0  ;;  %v341_v61 = vadd.f32 %v623_v1, %v302_v53  ;;  %v370_v62 = vmax.f32 %v338_v54, 0.0  ;;  %v371_v63 = vmax.f32 %v339_v55, 0.0 }
  0x2a   : > { %v372_v2 = vmax.f32 %v340_v56, 0.0  ;;  %v342_v3 = vadd.f32 %v623_v1, %v303_v57  ;;  %399 = vst [vmem:[%s646_s27 + $0xc0] sm:$0xff] %v367_v58  ;;  %400 = vst [vmem:[%s646_s27 + $0xc8] sm:$0xff] %v368_v59 }
  0x2b   : > { %401 = vst [vmem:[%s646_s27 + $0xd0] sm:$0xff] %v369_v60  ;;  %v373_v4 = vmax.f32 %v341_v61, 0.0  ;;  %402 = vst [vmem:[%s646_s27 + $0xd8] sm:$0xff] %v370_v62 }
  0x2c   : > { %403 = vst [vmem:[%s646_s27 + $0xe0] sm:$0xff] %v371_v63  ;;  %404 = vst [vmem:[%s646_s27 + $0xe8] sm:$0xff] %v372_v2  ;;  %v374_v0 = vmax.f32 %v342_v3, 0.0 }
  0x2d   : > { %405 = vst [vmem:[%s646_s27 + $0xf0] sm:$0xff] %v373_v4 }
  0x2e   : > { %406 = vst [vmem:[%s646_s27 + $0xf8] sm:$0xff] %v374_v0 }
  0x2f PF: > { %s13_s14 = sadd.s32 1, %s570_s14   ;;  %s771_s12 = smov %s566_s13 }
  0x30   : > { %p10_p5 = scmp.ge.s32.totalorder %s13_s14, 4   ;;  %s772_s13 = smov %s774_s15 }
  0x32   :  { %12 = sbr.rel (!%p10_p5) target bundleno = 2 (0x2), region = 68 }

// kernel: bottleneck_forward.4
= control target key start
LH: loop header
LB: loop body
LE: loop exit
PB: predicated region body
PF: predicated region fallthrough
CT: control target
= control target key end

     0   :  { %s1065_s12 = smov 0   ;;  %s1067_s13 = smov 0   ;;  %s1270_s0 = inlined_call_operand.vmem [shape: bf16[512,128], index: 0, kind: input, shape index: {}]   ;;  %s1271_s1 = inlined_call_operand.vmem [shape: bf16[128,128], index: 1, kind: input, shape index: {}]   ;;  %s1272_s2 = inlined_call_operand.vmem [shape: f32[512,128], index: 2, kind: output, shape index: {0}]   ;;  %s1273_s3 = inlined_call_operand.vmem [shape: f32[2,128], index: 3, kind: output, shape index: {1}]  }
   0x1   :  { %s1069_s14 = smov 0  }
   0x2 LB: > { %s23_s15 = sadd.s32 1, %s1039_s13  ;;  %p851_p0 = scmp.ge.s32.totalorder %s1043_s14, 1  ;;  %s1043_s14 = sphi %s1069_s14, %s14_s14   ;;  %s1039_s13 = sphi %s1067_s13, %s1275_s13   ;;  %s1035_s12 = sphi %s1065_s12, %s1274_s12  }
   0x3   : > { %p24_p1 = scmp.ge.s32.totalorder %s23_s15, 2  ;;  %p164_p2 = scmp.lt.s32.totalorder %s1043_s14, 3 }
   0x5   : > { %s1277_s15 = smov (%p24_p1, %s23_s15), 0  ;;  %p165_p3 = pnand %p851_p0, %p164_p2 }
   0x6   : > { %v997_v0 = vld [vmem:[%s1271_s1] sm:$0xff] (!%p165_p3)   ;;  %s852_s18 = sshll.u32 (!%p165_p3), %s1035_s12, 5  ;;  %v998_v1 = vld [vmem:[%s1271_s1 + $0x8] sm:$0xff] (!%p165_p3)   ;;  %v999_v2 = vld [vmem:[%s1271_s1 + $0x10] sm:$0xff] (!%p165_p3)   ;;  %vm714_vm0 = vcmask (!%p165_p3), 1040384   ;;  %p880_p5 = scmp.ne.s32.totalorder (!%p165_p3), %s1035_s12, 0 }
   0x7   : > { %168 = sbr.rel (%p165_p3) target bundleno = 342 (0x156), region = 28  ;;  %p200_p4 = scmp.lt.s32.totalorder (!%p165_p3), %s852_s18, 63  ;;  %909 = vmatprep.subr.bf16.mxu0 (!%p165_p3), %v997_v0  ;;  %957 = vmatprep.subr.bf16.mxu1 (!%p165_p3), %v997_v0  ;;  %v1000_v3 = vld [vmem:[%s1271_s1 + $0x18] sm:$0xff] (!%p165_p3)   ;;  %v1001_v5 = vld [vmem:[%s1271_s1 + $0x20] sm:$0xff] (!%p165_p3)   ;;  %v1002_v6 = vld [vmem:[%s1271_s1 + $0x28] sm:$0xff] (!%p165_p3)  }
   0x8   : > { %910 = vmatpush3.bf16.msra.mxu0 (!%p165_p3), %v997_v0  ;;  %965 = vmatpush3.bf16.msra.mxu1 (!%p165_p3), %v997_v0  ;;  %v1003_v8 = vld [vmem:[%s1271_s1 + $0x30] sm:$0xff] (!%p165_p3)   ;;  %v1004_v9 = vld [vmem:[%s1271_s1 + $0x38] sm:$0xff] (!%p165_p3)  }
   0x9   : > { %911 = vmatprep.subr.bf16.mxu0 (!%p165_p3), %v998_v1  ;;  %958 = vmatprep.subr.bf16.mxu1 (!%p165_p3), %v998_v1 }
   0xc   : > { %912 = vmatpush3.bf16.msra.mxu0 (!%p165_p3), %v998_v1  ;;  %966 = vmatpush3.bf16.msra.mxu1 (!%p165_p3), %v998_v1 }
   0xd   : > { %913 = vmatprep.subr.bf16.mxu0 (!%p165_p3), %v999_v2  ;;  %959 = vmatprep.subr.bf16.mxu1 (!%p165_p3), %v999_v2 }
   0xe   : > { %s1279_s18 = smov (!%p200_p4, %s852_s18), 63 }
   0xf   : > { %s853_s23 = sshll.u32 %s1279_s18, 2  ;;  %s855_s10 = sshll.u32 %s1279_s18, 3 }
  0x10   : > { %s1101_s26 = scalar_lea.vmem %s1270_s0, %s853_s23  ;;  %914 = vmatpush3.bf16.msra.mxu0 %v999_v2  ;;  %967 = vmatpush3.bf16.msra.mxu1 %v999_v2  ;;  %s1138_s17 = scalar_lea.vmem %s1272_s2, %s855_s10 }
  0x11   : > { %v1005_v4 = vld [vmem:[%s1101_s26] sm:$0xff]   ;;  %915 = vmatprep.subr.bf16.mxu0 %v1000_v3  ;;  %960 = vmatprep.subr.bf16.mxu1 %v1000_v3  ;;  %v1006_v10 = vld [vmem:[%s1101_s26 + $0x8] sm:$0xff]   ;;  %v1007_v12 = vld [vmem:[%s1101_s26 + $0x10] sm:$0xff]  }
  0x12   : > { %925 = vmatprep.mubr.bf16.mxu0 %v1005_v4  ;;  %v1013_v7 = vld [vmem:[%s1101_s26 + $0x40] sm:$0xff]   ;;  %v1014_v11 = vld [vmem:[%s1101_s26 + $0x48] sm:$0xff]   ;;  %v1015_v13 = vld [vmem:[%s1101_s26 + $0x50] sm:$0xff]  }
  0x13   : > { %941 = vmatprep.mubr.bf16.mxu1 %v1013_v7  ;;  %v1008_v14 = vld [vmem:[%s1101_s26 + $0x18] sm:$0xff]   ;;  %v1009_v16 = vld [vmem:[%s1101_s26 + $0x20] sm:$0xff]   ;;  %v1010_v18 = vld [vmem:[%s1101_s26 + $0x28] sm:$0xff]  }
  0x14   : > { %916 = vmatpush3.bf16.msra.mxu0 %v1000_v3  ;;  %968 = vmatpush3.bf16.msra.mxu1 %v1000_v3  ;;  %v1016_v15 = vld [vmem:[%s1101_s26 + $0x58] sm:$0xff]   ;;  %v1017_v17 = vld [vmem:[%s1101_s26 + $0x60] sm:$0xff]   ;;  %v1018_v19 = vld [vmem:[%s1101_s26 + $0x68] sm:$0xff]  }
  0x15   : > { %917 = vmatprep.subr.bf16.mxu0 %v1001_v5  ;;  %961 = vmatprep.subr.bf16.mxu1 %v1001_v5  ;;  %v1011_v20 = vld [vmem:[%s1101_s26 + $0x30] sm:$0xff]   ;;  %v1012_v22 = vld [vmem:[%s1101_s26 + $0x38] sm:$0xff]  }
  0x16   : > { %v1019_v21 = vld [vmem:[%s1101_s26 + $0x70] sm:$0xff]   ;;  %v1020_v23 = vld [vmem:[%s1101_s26 + $0x78] sm:$0xff]  }
  0x18   : > { %918 = vmatpush3.bf16.msra.mxu0 %v1001_v5  ;;  %969 = vmatpush3.bf16.msra.mxu1 %v1001_v5 }
  0x19   : > { %919 = vmatprep.subr.bf16.mxu0 %v1002_v6  ;;  %962 = vmatprep.subr.bf16.mxu1 %v1002_v6 }
  0x1c   : > { %920 = vmatpush3.bf16.msra.mxu0 %v1002_v6  ;;  %970 = vmatpush3.bf16.msra.mxu1 %v1002_v6 }
  0x1d   : > { %921 = vmatprep.subr.bf16.mxu0 %v1003_v8  ;;  %963 = vmatprep.subr.bf16.mxu1 %v1003_v8 }
  0x20   : > { %922 = vmatpush3.bf16.msra.mxu0 %v1003_v8  ;;  %971 = vmatpush3.bf16.msra.mxu1 %v1003_v8 }
  0x21   : > { %923 = vmatprep.subr.bf16.mxu0 %v1004_v9  ;;  %964 = vmatprep.subr.bf16.mxu1 %v1004_v9 }
  0x24   : > { %924 = vmatpush3.bf16.msra.mxu0 %v1004_v9  ;;  %972 = vmatpush3.bf16.msra.mxu1 %v1004_v9 }
  0x27   : > { %926 = vmatmul.mubr.bf16.vlgmr.msra.gmra.mrb[0].mxu0 %v1006_v10  ;;  %942 = vmatmul.mubr.bf16.vlgmr.msra.gmra.mrb[0].mxu1 %v1014_v11 }
  0x28   : > { %929 = vmatprep.mubr.bf16.mxu0 %v1007_v12  ;;  %945 = vmatprep.mubr.bf16.mxu1 %v1015_v13 }
  0x2f   : > { %930 = vmatmul.mubr.bf16.gmra.mrb[4].mxu0 %v1008_v14  ;;  %946 = vmatmul.mubr.bf16.gmra.mrb[4].mxu1 %v1016_v15 }
  0x30   : > { %933 = vmatprep.mubr.bf16.mxu0 %v1009_v16  ;;  %949 = vmatprep.mubr.bf16.mxu1 %v1017_v17 }
  0x37   : > { %934 = vmatmul.mubr.bf16.gmra.mrb[8].mxu0 %v1010_v18  ;;  %950 = vmatmul.mubr.bf16.gmra.mrb[8].mxu1 %v1018_v19 }
  0x38   : > { %937 = vmatprep.mubr.bf16.mxu0 %v1011_v20  ;;  %953 = vmatprep.mubr.bf16.mxu1 %v1019_v21 }
  0x3f   : > { %938 = vmatmul.mubr.bf16.gmra.mrb[12].mxu0 %v1012_v22  ;;  %954 = vmatmul.mubr.bf16.gmra.mrb[12].mxu1 %v1020_v23 }
  0xfa   : > { %v927_v24 = vpop.f32.mrb[0].mxu0  ;;  %v1140_v25 = vpop.f32.mrb[0].mxu1 }
  0xfb   : > { %578 = vst [vmem:[%s1138_s17 + $0x10] sm:$0xff] %v927_v24  ;;  %v449_v26 = vpop.f32.mrb[1].mxu0  ;;  %594 = vst [vmem:[%s1138_s17 + $0x90] sm:$0xff] %v1140_v25  ;;  %v1145_v27 = vpop.f32.mrb[1].mxu1  ;;  %v647_v35 = vmul.f32 %v927_v24, %v927_v24 }
  0xfc   : > { %576 = vst [vmem:[%s1138_s17] sm:$0xff] %v449_v26  ;;  %v928_v28 = vpop.f32.mrb[2].mxu0  ;;  %592 = vst [vmem:[%s1138_s17 + $0x80] sm:$0xff] %v1145_v27  ;;  %v1150_v29 = vpop.f32.mrb[2].mxu1  ;;  %v645_v32 = vmul.f32 %v449_v26, %v449_v26 }
  0xfd   : > { %579 = vst [vmem:[%s1138_s17 + $0x18] sm:$0xff] %v928_v28  ;;  %v452_v30 = vpop.f32.mrb[3].mxu0  ;;  %595 = vst [vmem:[%s1138_s17 + $0x98] sm:$0xff] %v1150_v29  ;;  %v1155_v31 = vpop.f32.mrb[3].mxu1  ;;  %v648_v38 = vmul.f32 %v928_v28, %v928_v28 }
  0xfe   : > { %577 = vst [vmem:[%s1138_s17 + $0x8] sm:$0xff] %v452_v30  ;;  %v608_v33 = vadd.f32 %v452_v30, %v449_v26  ;;  %v646_v34 = vmul.f32 %v452_v30, %v452_v30  ;;  %593 = vst [vmem:[%s1138_s17 + $0x88] sm:$0xff] %v1155_v31 }
 0x100   : > { %v609_v36 = vadd.f32 %v927_v24, %v608_v33  ;;  %v677_v37 = vadd.f32 %v646_v34, %v645_v32 }
 0x102   : > { %v678_v39 = vadd.f32 %v677_v37, %v647_v35  ;;  %v931_v40 = vpop.f32.mrb[4].mxu0  ;;  %v610_v41 = vadd.f32 %v928_v28, %v609_v36  ;;  %v1160_v42 = vpop.f32.mrb[4].mxu1 }
 0x103   : > { %582 = vst [vmem:[%s1138_s17 + $0x30] sm:$0xff] %v931_v40  ;;  %v465_v43 = vpop.f32.mrb[5].mxu0  ;;  %598 = vst [vmem:[%s1138_s17 + $0xb0] sm:$0xff] %v1160_v42  ;;  %v1165_v44 = vpop.f32.mrb[5].mxu1  ;;  %v651_v55 = vmul.f32 %v931_v40, %v931_v40 }
 0x104   : > { %580 = vst [vmem:[%s1138_s17 + $0x20] sm:$0xff] %v465_v43  ;;  %v611_v45 = vadd.f32 %v610_v41, %v465_v43  ;;  %v649_v46 = vmul.f32 %v465_v43, %v465_v43  ;;  %v679_v47 = vadd.f32 %v678_v39, %v648_v38  ;;  %v932_v48 = vpop.f32.mrb[6].mxu0  ;;  %596 = vst [vmem:[%s1138_s17 + $0xa0] sm:$0xff] %v1165_v44  ;;  %v1170_v49 = vpop.f32.mrb[6].mxu1 }
 0x105   : > { %583 = vst [vmem:[%s1138_s17 + $0x38] sm:$0xff] %v932_v48  ;;  %v468_v50 = vpop.f32.mrb[7].mxu0  ;;  %599 = vst [vmem:[%s1138_s17 + $0xb8] sm:$0xff] %v1170_v49  ;;  %v1175_v51 = vpop.f32.mrb[7].mxu1  ;;  %v652_v58 = vmul.f32 %v932_v48, %v932_v48  ;;  %v661_v41 = vmul.f32 %v1145_v27, %v1145_v27 }
 0x106   : > { %v680_v52 = vadd.f32 %v679_v47, %v649_v46  ;;  %581 = vst [vmem:[%s1138_s17 + $0x28] sm:$0xff] %v468_v50  ;;  %v612_v53 = vadd.f32 %v611_v45, %v468_v50  ;;  %v650_v54 = vmul.f32 %v468_v50, %v468_v50  ;;  %597 = vst [vmem:[%s1138_s17 + $0xa8] sm:$0xff] %v1175_v51 }
 0x107   : > { %v663_v50 = vmul.f32 %v1140_v25, %v1140_v25 }
 0x108   : > { %v613_v56 = vadd.f32 %v931_v40, %v612_v53  ;;  %v681_v57 = vadd.f32 %v680_v52, %v650_v54  ;;  %v664_v54 = vmul.f32 %v1150_v29, %v1150_v29 }
 0x10a   : > { %v682_v59 = vadd.f32 %v681_v57, %v651_v55  ;;  %v935_v60 = vpop.f32.mrb[8].mxu0  ;;  %v614_v61 = vadd.f32 %v932_v48, %v613_v56  ;;  %v1180_v62 = vpop.f32.mrb[8].mxu1  ;;  %v662_v48 = vmul.f32 %v1155_v31, %v1155_v31 }
 0x10b   : > { %586 = vst [vmem:[%s1138_s17 + $0x50] sm:$0xff] %v935_v60  ;;  %v481_v63 = vpop.f32.mrb[9].mxu0  ;;  %602 = vst [vmem:[%s1138_s17 + $0xd0] sm:$0xff] %v1180_v62  ;;  %v1185_v0 = vpop.f32.mrb[9].mxu1  ;;  %v655_v11 = vmul.f32 %v935_v60, %v935_v60 }
 0x10c   : > { %584 = vst [vmem:[%s1138_s17 + $0x40] sm:$0xff] %v481_v63  ;;  %v615_v1 = vadd.f32 %v614_v61, %v481_v63  ;;  %v653_v2 = vmul.f32 %v481_v63, %v481_v63  ;;  %v683_v3 = vadd.f32 %v682_v59, %v652_v58  ;;  %v936_v4 = vpop.f32.mrb[10].mxu0  ;;  %600 = vst [vmem:[%s1138_s17 + $0xc0] sm:$0xff] %v1185_v0  ;;  %v1190_v5 = vpop.f32.mrb[10].mxu1 }
 0x10d   : > { %587 = vst [vmem:[%s1138_s17 + $0x58] sm:$0xff] %v936_v4  ;;  %v484_v6 = vpop.f32.mrb[11].mxu0  ;;  %603 = vst [vmem:[%s1138_s17 + $0xd8] sm:$0xff] %v1190_v5  ;;  %v1195_v7 = vpop.f32.mrb[11].mxu1  ;;  %v656_v14 = vmul.f32 %v936_v4, %v936_v4 }
 0x10e   : > { %v684_v8 = vadd.f32 %v683_v3, %v653_v2  ;;  %585 = vst [vmem:[%s1138_s17 + $0x48] sm:$0xff] %v484_v6  ;;  %v616_v9 = vadd.f32 %v615_v1, %v484_v6  ;;  %v654_v10 = vmul.f32 %v484_v6, %v484_v6  ;;  %601 = vst [vmem:[%s1138_s17 + $0xc8] sm:$0xff] %v1195_v7 }
 0x110   : > { %v617_v12 = vadd.f32 %v935_v60, %v616_v9  ;;  %v685_v13 = vadd.f32 %v684_v8, %v654_v10  ;;  %v666_v60 = vmul.f32 %v1175_v51, %v1175_v51  ;;  %v670_v8 = vmul.f32 %v1195_v7, %v1195_v7 }
 0x112   : > { %v686_v15 = vadd.f32 %v685_v13, %v655_v11  ;;  %v939_v16 = vpop.f32.mrb[12].mxu0  ;;  %v618_v17 = vadd.f32 %v936_v4, %v617_v12  ;;  %v1200_v18 = vpop.f32.mrb[12].mxu1 }
 0x113   : > { %590 = vst [vmem:[%s1138_s17 + $0x70] sm:$0xff] %v939_v16  ;;  %v497_v19 = vpop.f32.mrb[13].mxu0  ;;  %606 = vst [vmem:[%s1138_s17 + $0xf0] sm:$0xff] %v1200_v18  ;;  %v561_v20 = vpop.f32.mrb[13].mxu1  ;;  %v659_v35 = vmul.f32 %v939_v16, %v939_v16 }
 0x114   : > { %588 = vst [vmem:[%s1138_s17 + $0x60] sm:$0xff] %v497_v19  ;;  %v619_v21 = vadd.f32 %v618_v17, %v497_v19  ;;  %v657_v22 = vmul.f32 %v497_v19, %v497_v19  ;;  %v687_v23 = vadd.f32 %v686_v15, %v656_v14  ;;  %v940_v24 = vpop.f32.mrb[14].mxu0  ;;  %604 = vst [vmem:[%s1138_s17 + $0xe0] sm:$0xff] %v561_v20  ;;  %v956_v26 = vpop.f32.mrb[14].mxu1 }
 0x115   : > { %591 = vst [vmem:[%s1138_s17 + $0x78] sm:$0xff] %v940_v24  ;;  %v500_v28 = vpop.f32.mrb[15].mxu0  ;;  %607 = vst [vmem:[%s1138_s17 + $0xf8] sm:$0xff] %v956_v26  ;;  %v564_v30 = vpop.f32.mrb[15].mxu1  ;;  %v660_v38 = vmul.f32 %v940_v24, %v940_v24 }
 0x116   : > { %v688_v32 = vadd.f32 %v687_v23, %v657_v22  ;;  %589 = vst [vmem:[%s1138_s17 + $0x68] sm:$0xff] %v500_v28  ;;  %v620_v33 = vadd.f32 %v619_v21, %v500_v28  ;;  %v658_v34 = vmul.f32 %v500_v28, %v500_v28  ;;  %605 = vst [vmem:[%s1138_s17 + $0xe8] sm:$0xff] %v564_v30 }
 0x117   : > { %v674_v17 = vmul.f32 %v564_v30, %v564_v30 }
 0x118   : > { %v621_v36 = vadd.f32 %v939_v16, %v620_v33  ;;  %v689_v37 = vadd.f32 %v688_v32, %v658_v34 }
 0x11a   : > { %v690_v39 = vadd.f32 %v689_v37, %v659_v35  ;;  %v622_v40 = vadd.f32 %v940_v24, %v621_v36 }
 0x11c   : > { %v623_v43 = vadd.f32 %v622_v40, %v1145_v27  ;;  %v691_v45 = vadd.f32 %v690_v39, %v660_v38  ;;  %v665_v27 = vmul.f32 %v1165_v44, %v1165_v44 }
 0x11e   : > { %v692_v46 = vadd.f32 %v691_v45, %v661_v41  ;;  %v624_v47 = vadd.f32 %v623_v43, %v1155_v31 }
 0x120   : > { %v625_v52 = vadd.f32 %v1140_v25, %v624_v47  ;;  %v693_v53 = vadd.f32 %v692_v46, %v662_v48  ;;  %v667_v25 = vmul.f32 %v1160_v42, %v1160_v42 }
 0x122   : > { %v694_v55 = vadd.f32 %v693_v53, %v663_v50  ;;  %v626_v56 = vadd.f32 %v1150_v29, %v625_v52  ;;  %v668_v29 = vmul.f32 %v1170_v49, %v1170_v49 }
 0x124   : > { %v627_v57 = vadd.f32 %v626_v56, %v1165_v44  ;;  %v695_v58 = vadd.f32 %v694_v55, %v664_v54  ;;  %v669_v44 = vmul.f32 %v1185_v0, %v1185_v0 }
 0x126   : > { %v696_v59 = vadd.f32 %v695_v58, %v665_v27  ;;  %v628_v31 = vadd.f32 %v627_v57, %v1175_v51 }
 0x128   : > { %v629_v61 = vadd.f32 %v1160_v42, %v628_v31  ;;  %v697_v63 = vadd.f32 %v696_v59, %v666_v60  ;;  %v671_v42 = vmul.f32 %v1180_v62, %v1180_v62 }
 0x12a   : > { %v698_v1 = vadd.f32 %v697_v63, %v667_v25  ;;  %v630_v2 = vadd.f32 %v1170_v49, %v629_v61  ;;  %v672_v49 = vmul.f32 %v1190_v5, %v1190_v5 }
 0x12c   : > { %v631_v3 = vadd.f32 %v630_v2, %v1185_v0  ;;  %v699_v4 = vadd.f32 %v698_v1, %v668_v29  ;;  %v673_v0 = vmul.f32 %v561_v20, %v561_v20 }
 0x12e   : > { %v700_v6 = vadd.f32 %v699_v4, %v669_v44  ;;  %v632_v51 = vadd.f32 %v631_v3, %v1195_v7  ;;  %v675_v7 = vmul.f32 %v1200_v18, %v1200_v18 }
 0x130   : > { %v633_v9 = vadd.f32 %v1180_v62, %v632_v51  ;;  %v701_v10 = vadd.f32 %v700_v6, %v670_v8  ;;  %v676_v62 = vmul.f32 %v956_v26, %v956_v26 }
 0x132   : > { %v702_v11 = vadd.f32 %v701_v10, %v671_v42  ;;  %v634_v12 = vadd.f32 %v1190_v5, %v633_v9 }
 0x134   : > { %v635_v13 = vadd.f32 %v634_v12, %v561_v20  ;;  %v703_v14 = vadd.f32 %v702_v11, %v672_v49 }
 0x136   : > { %v704_v15 = vadd.f32 %v703_v14, %v673_v0  ;;  %v636_v16 = vadd.f32 %v635_v13, %v564_v30 }
 0x138   : > { %v637_v19 = vadd.f32 %v1200_v18, %v636_v16  ;;  %v705_v21 = vadd.f32 %v704_v15, %v674_v17 }
 0x13a   : > { %v638_v22 = vadd.f32 %v956_v26, %v637_v19  ;;  %v706_v23 = vadd.f32 %v705_v21, %v675_v7 }
 0x13c   : > { %v639_v24 = vrot.slane %v638_v22, 4  ;;  %v707_v28 = vadd.f32 %v706_v23, %v676_v62 }
 0x13e   : > { %v640_v32 = vadd.f32 %v639_v24, %v638_v22  ;;  %v708_v33 = vrot.slane %v707_v28, 4 }
 0x140   : > { %v641_v5 = vrot.slane %v640_v32, 2  ;;  %v709_v34 = vadd.f32 %v708_v33, %v707_v28 }
 0x142   : > { %v642_v20 = vadd.f32 %v641_v5, %v640_v32  ;;  %v710_v35 = vrot.slane %v709_v34, 2 }
 0x144   : > { %v643_v36 = vrot.slane %v642_v20, 1  ;;  %v711_v37 = vadd.f32 %v710_v35, %v709_v34  ;;  %719 = sbr.rel (%p880_p5) target bundleno = 332 (0x14c), region = 32 }
 0x146   : > { %v712_v30 = vrot.slane %v711_v37, 1  ;;  %v644_v38 = vadd.f32 %v643_v36, %v642_v20 }
 0x148   : > { %v713_v39 = vadd.f32 %v712_v30, %v711_v37 }
 0x14a   : > { %v715_v40 = vsel %vm714_vm0, %v644_v38, %v713_v39 }
 0x14b   : > { %720 = vst [vmem:[%s1273_s3] sm:$0x3] %v715_v40 }
 0x14c PF: > { %p881_p6 = scmp.eq.s32.totalorder %s1035_s12, 0 }
 0x14e   : > { %724 = sbr.rel (%p881_p6) target bundleno = 342 (0x156), region = 36 }
 0x152   : > { %v725_v18 = vld [vmem:[%s1273_s3] sm:$0x3] (!%p881_p6) }
 0x153   : > { %v726_v26 = vadd.f32 (!%p881_p6), %v725_v18, %v715_v40 }
 0x155   : > { %727 = vst [vmem:[%s1273_s3] sm:$0x3] %v726_v26 }
 0x156 PF: > { %s14_s14 = sadd.s32 1, %s1043_s14   ;;  %s1274_s12 = smov %s1039_s13 }
 0x157   : > { %p11_p7 = scmp.ge.s32.totalorder %s14_s14, 4   ;;  %s1275_s13 = smov %s1277_s15 }
 0x159   :  { %13 = sbr.rel (!%p11_p7) target bundleno = 2 (0x2), region = 81 }

</bundles_post_ra>
